<compile_context>
chip_gen: v6e
topology: v6e:2x2x1
jax: 0.10.0
libtpu: 0.0.40
codegen_flags: <defaults>
</compile_context>

<pallas_src>
import jax
import jax.numpy as jnp
from jax.experimental import pallas as pl
from jax.experimental.pallas import tpu as pltpu


def _lstm_kernel(x_ref, w_ih_ref, w_hh_ref, reg_ref, out_ref):
    TB = x_ref.shape[0]            # x is time-major flattened: (T*B, D+1) bf16
    H = w_hh_ref.shape[0]
    B = out_ref.shape[0]
    T = TB // B

    # ---- Input projection for all timesteps at once; bias already folded in
    # via the trailing ones column of x / bias row of w_ih. One bf16 MXU pass.
    x_proj = jnp.dot(x_ref[...], w_ih_ref[...],
                     preferred_element_type=jnp.float32)        # (T*B, 4H) f32

    w_hh = w_hh_ref[...]                                        # (H, 4H) bf16, resident

    # ---- Constant gate scale, hoisted: 0.5 on the i/f/o lane groups, 1.0 on g,
    # so ONE tanh over the full (B, 4H) vreg yields tanh(g) directly and
    # sigmoid(x) = 0.5 * tanh(x/2) + 0.5 for the i/f/o lanes.
    lane = jax.lax.broadcasted_iota(jnp.int32, (B, 4 * H), 1)
    gate_scale = jnp.where((lane >= 2 * H) & (lane < 3 * H), 1.0, 0.5)

    # ---- Recurrence: h / c carried as values (vregs), fully unrolled over T.
    h = jnp.zeros((B, H), jnp.float32)
    c = jnp.zeros((B, H), jnp.float32)

    # TODO(synk): if T grows beyond ~16, switch to lax.fori_loop + VMEM scratch
    # for x_proj (pl.ds row reads) so live ranges stay bounded; fine at T=8.
    for t in range(T):                                          # T static & small
        gx = x_proj[t * B:(t + 1) * B, :]                       # vreg-aligned row block
        if t == 0:
            gates = gx                                          # h0 == 0: skip dead matmul
        else:
            gates = gx + jnp.dot(h.astype(jnp.bfloat16), w_hh,
                                 preferred_element_type=jnp.float32)   # (B, 4H)

        t_all = jnp.tanh(gates * gate_scale)                    # single EUP pass
        i_g = 0.5 * t_all[:, 0 * H:1 * H] + 0.5
        f_g = 0.5 * t_all[:, 1 * H:2 * H] + 0.5
        g_g = t_all[:, 2 * H:3 * H]
        o_g = 0.5 * t_all[:, 3 * H:4 * H] + 0.5

        c = f_g * c + i_g * g_g
        h = o_g * jnp.tanh(c)

    # ---- Regressor on the last hidden state: VPU multiply + lane reduction
    # (avoids an N=1 MXU matmul). w_r / b_r packed in one (1, H+1) slab.
    w_r = reg_ref[:, 0:H]
    b_r = reg_ref[:, H:H + 1]
    out_ref[...] = jnp.sum(h * w_r, axis=1, keepdims=True) + b_r   # (B, 1)


def prepare_params(params):
    """One-time parameter baking (outside the per-call path)."""
    H = params["w_hh"].shape[0] // 4
    b = (params["b_ih"] + params["b_hh"]).reshape(1, 4 * H)
    w_ih_aug = jnp.concatenate([params["w_ih"].T, b], axis=0).astype(jnp.bfloat16)  # (D+1, 4H)
    w_hh_t = params["w_hh"].T.astype(jnp.bfloat16)                                  # (H, 4H)
    reg = jnp.concatenate([params["w_r"].reshape(1, H),
                           params["b_r"].reshape(1, 1)], axis=1).astype(jnp.float32)  # (1, H+1)
    return {"w_ih_aug": w_ih_aug, "w_hh_t": w_hh_t, "reg": reg}


@jax.jit
def lstm_regression_pallas(x, prepped):
    """x: (B, T, D) float32 (batch_first, like nn.LSTM).  Returns (B, 1) f32."""
    B, T, D = x.shape

    # Per-call x prep fuses into a single small copy under jit: time-major
    # flatten (so timestep t is the contiguous row block [t*B, (t+1)*B)),
    # ones column for the folded bias, bf16 cast (halves the x DMA).
    x2d = jnp.transpose(x, (1, 0, 2)).reshape(T * B, D)
    x_aug = jnp.concatenate([x2d, jnp.ones((T * B, 1), x.dtype)],
                            axis=1).astype(jnp.bfloat16)         # (T*B, D+1)

    vmem = pl.BlockSpec(memory_space=pltpu.MemorySpace.VMEM)      # whole array in VMEM
    return pl.pallas_call(
        _lstm_kernel,
        out_shape=jax.ShapeDtypeStruct((B, 1), jnp.float32),
        in_specs=[vmem, vmem, vmem, vmem],
        out_specs=vmem,
    )(x_aug, prepped["w_ih_aug"], prepped["w_hh_t"], prepped["reg"])


def lstm_regression_ref(x, params):
    """Pure-JAX f32 reference matching PyTorch nn.LSTM + Linear semantics."""
    B, T, D = x.shape
    H = params["w_hh"].shape[0] // 4
    w_ih, w_hh = params["w_ih"], params["w_hh"]
    b = params["b_ih"] + params["b_hh"]

    def step(carry, x_t):
        h, c = carry
        gates = x_t @ w_ih.T + h @ w_hh.T + b
        i = jax.nn.sigmoid(gates[:, 0 * H:1 * H])
        f = jax.nn.sigmoid(gates[:, 1 * H:2 * H])
        g = jnp.tanh(gates[:, 2 * H:3 * H])
        o = jax.nn.sigmoid(gates[:, 3 * H:4 * H])
        c = f * c + i * g
        h = o * jnp.tanh(c)
        return (h, c), None

    h0 = jnp.zeros((B, H), jnp.float32)
    c0 = jnp.zeros((B, H), jnp.float32)
    (h_last, _), _ = jax.lax.scan(step, (h0, c0), jnp.swapaxes(x, 0, 1))
    return h_last @ params["w_r"].T + params["b_r"]


def init_params(key, input_size, hidden_size):
    """Deterministic init mimicking PyTorch's uniform(-1/sqrt(H), 1/sqrt(H))."""
    ks = jax.random.split(key, 6)
    k = 1.0 / jnp.sqrt(hidden_size)
    u = lambda kk, shape: jax.random.uniform(kk, shape, jnp.float32, -k, k)
    return {
        "w_ih": u(ks[0], (4 * hidden_size, input_size)),
        "w_hh": u(ks[1], (4 * hidden_size, hidden_size)),
        "b_ih": u(ks[2], (4 * hidden_size,)),
        "b_hh": u(ks[3], (4 * hidden_size,)),
        "w_r":  u(ks[4], (1, hidden_size)),
        "b_r":  u(ks[5], (1,)),
    }


if __name__ == "__main__":
    B, T, D, H = 8, 8, 16, 32   # batch, seq len, input_size, n_hidden (n_layers=1)

    key = jax.random.PRNGKey(0)
    k_x, k_p = jax.random.split(key)
    x = jax.random.normal(k_x, (B, T, D), jnp.float32)
    params = init_params(k_p, D, H)

    prepped = prepare_params(params)
    out = lstm_regression_pallas(x, prepped)
    out = jax.block_until_ready(out)

    ref = lstm_regression_ref(x, params)
    assert out.shape == (B, 1), out.shape
    # Tolerance loosened vs. the pure-f32 version because the MXU operands
    # (x, W_ih, W_hh, h) are bf16 with f32 accumulation.
    assert jnp.allclose(out, ref, atol=3e-2, rtol=3e-2), (
        f"max abs err {jnp.max(jnp.abs(out - ref))}")

    print("KERNEL_OK")
</pallas_src>

<mosaic_0001>
module attributes {stable_mosaic.version = 11 : i64} {
  func.func @_lstm_kernel(%arg0: memref<64x17xbf16, #tpu.memory_space<vmem>>, %arg1: memref<17x128xbf16, #tpu.memory_space<vmem>>, %arg2: memref<32x128xbf16, #tpu.memory_space<vmem>>, %arg3: memref<1x33xf32, #tpu.memory_space<vmem>>, %arg4: memref<8x1xf32, #tpu.memory_space<vmem>>) attributes {dimension_semantics = [], scalar_prefetch = 0 : i64, scratch_operands = 0 : i64, tpu.core_type = #tpu.core_type<tc>} {
    %c0 = arith.constant 0 : index
    %c0_0 = arith.constant 0 : index
    %0 = vector.load %arg0[%c0, %c0_0] : memref<64x17xbf16, #tpu.memory_space<vmem>>, vector<64x17xbf16>
    %c0_1 = arith.constant 0 : index
    %c0_2 = arith.constant 0 : index
    %1 = vector.load %arg1[%c0_1, %c0_2] : memref<17x128xbf16, #tpu.memory_space<vmem>>, vector<17x128xbf16>
    %cst = arith.constant dense<0.000000e+00> : vector<64x128xf32>
    %2 = tpu.matmul %0, %1, %cst {dimension_numbers = #tpu.dot_dimension_numbers<[1], [0], [0], [1], [0, 0, 1, 1], [], []>} : vector<64x17xbf16>, vector<17x128xbf16>, vector<64x128xf32> -> vector<64x128xf32>
    %c0_3 = arith.constant 0 : index
    %c0_4 = arith.constant 0 : index
    %3 = vector.load %arg2[%c0_3, %c0_4] : memref<32x128xbf16, #tpu.memory_space<vmem>>, vector<32x128xbf16>
    %4 = tpu.iota {dimensions = array<i32: 1>} : vector<8x128xi32>
    %c64_i32 = arith.constant 64 : i32
    %5 = vector.broadcast %c64_i32 : i32 to vector<8x128xi32>
    %6 = arith.cmpi sge, %4, %5 : vector<8x128xi32>
    %c96_i32 = arith.constant 96 : i32
    %7 = vector.broadcast %c96_i32 : i32 to vector<8x128xi32>
    %8 = arith.cmpi slt, %4, %7 : vector<8x128xi32>
    %9 = arith.andi %6, %8 : vector<8x128xi1>
    %cst_5 = arith.constant 1.000000e+00 : f32
    %cst_6 = arith.constant 5.000000e-01 : f32
    %10 = vector.broadcast %cst_5 : f32 to vector<8x128xf32>
    %11 = vector.broadcast %cst_6 : f32 to vector<8x128xf32>
    %12 = arith.select %9, %10, %11 : vector<8x128xi1>, vector<8x128xf32>
    %cst_7 = arith.constant 0.000000e+00 : f32
    %13 = vector.broadcast %cst_7 : f32 to vector<8x32xf32>
    %14 = vector.extract_strided_slice %2 {offsets = [0, 0], sizes = [8, 128], strides = [1, 1]} : vector<64x128xf32> to vector<8x128xf32>
    %15 = arith.mulf %14, %12 : vector<8x128xf32>
    %16 = math.tanh %15 : vector<8x128xf32>
    %17 = vector.extract_strided_slice %16 {offsets = [0, 0], sizes = [8, 32], strides = [1, 1]} : vector<8x128xf32> to vector<8x32xf32>
    %cst_8 = arith.constant 5.000000e-01 : f32
    %18 = vector.broadcast %cst_8 : f32 to vector<8x32xf32>
    %19 = arith.mulf %18, %17 : vector<8x32xf32>
    %cst_9 = arith.constant 5.000000e-01 : f32
    %20 = vector.broadcast %cst_9 : f32 to vector<8x32xf32>
    %21 = arith.addf %19, %20 : vector<8x32xf32>
    %22 = vector.extract_strided_slice %16 {offsets = [0, 32], sizes = [8, 32], strides = [1, 1]} : vector<8x128xf32> to vector<8x32xf32>
    %cst_10 = arith.constant 5.000000e-01 : f32
    %23 = vector.broadcast %cst_10 : f32 to vector<8x32xf32>
    %24 = arith.mulf %23, %22 : vector<8x32xf32>
    %cst_11 = arith.constant 5.000000e-01 : f32
    %25 = vector.broadcast %cst_11 : f32 to vector<8x32xf32>
    %26 = arith.addf %24, %25 : vector<8x32xf32>
    %27 = vector.extract_strided_slice %16 {offsets = [0, 64], sizes = [8, 32], strides = [1, 1]} : vector<8x128xf32> to vector<8x32xf32>
    %28 = vector.extract_strided_slice %16 {offsets = [0, 96], sizes = [8, 32], strides = [1, 1]} : vector<8x128xf32> to vector<8x32xf32>
    %cst_12 = arith.constant 5.000000e-01 : f32
    %29 = vector.broadcast %cst_12 : f32 to vector<8x32xf32>
    %30 = arith.mulf %29, %28 : vector<8x32xf32>
    %cst_13 = arith.constant 5.000000e-01 : f32
    %31 = vector.broadcast %cst_13 : f32 to vector<8x32xf32>
    %32 = arith.addf %30, %31 : vector<8x32xf32>
    %33 = arith.mulf %26, %13 : vector<8x32xf32>
    %34 = arith.mulf %21, %27 : vector<8x32xf32>
    %35 = arith.addf %33, %34 : vector<8x32xf32>
    %36 = math.tanh %35 : vector<8x32xf32>
    %37 = arith.mulf %32, %36 : vector<8x32xf32>
    %38 = vector.extract_strided_slice %2 {offsets = [8, 0], sizes = [8, 128], strides = [1, 1]} : vector<64x128xf32> to vector<8x128xf32>
    %39 = arith.truncf %37 : vector<8x32xf32> to vector<8x32xbf16>
    %cst_14 = arith.constant dense<0.000000e+00> : vector<8x128xf32>
    %40 = tpu.matmul %39, %3, %cst_14 {dimension_numbers = #tpu.dot_dimension_numbers<[1], [0], [0], [1], [0, 0, 1, 1], [], []>} : vector<8x32xbf16>, vector<32x128xbf16>, vector<8x128xf32> -> vector<8x128xf32>
    %41 = arith.addf %38, %40 : vector<8x128xf32>
    %42 = arith.mulf %41, %12 : vector<8x128xf32>
    %43 = math.tanh %42 : vector<8x128xf32>
    %44 = vector.extract_strided_slice %43 {offsets = [0, 0], sizes = [8, 32], strides = [1, 1]} : vector<8x128xf32> to vector<8x32xf32>
    %cst_15 = arith.constant 5.000000e-01 : f32
    %45 = vector.broadcast %cst_15 : f32 to vector<8x32xf32>
    %46 = arith.mulf %45, %44 : vector<8x32xf32>
    %cst_16 = arith.constant 5.000000e-01 : f32
    %47 = vector.broadcast %cst_16 : f32 to vector<8x32xf32>
    %48 = arith.addf %46, %47 : vector<8x32xf32>
    %49 = vector.extract_strided_slice %43 {offsets = [0, 32], sizes = [8, 32], strides = [1, 1]} : vector<8x128xf32> to vector<8x32xf32>
    %cst_17 = arith.constant 5.000000e-01 : f32
    %50 = vector.broadcast %cst_17 : f32 to vector<8x32xf32>
    %51 = arith.mulf %50, %49 : vector<8x32xf32>
    %cst_18 = arith.constant 5.000000e-01 : f32
    %52 = vector.broadcast %cst_18 : f32 to vector<8x32xf32>
    %53 = arith.addf %51, %52 : vector<8x32xf32>
    %54 = vector.extract_strided_slice %43 {offsets = [0, 64], sizes = [8, 32], strides = [1, 1]} : vector<8x128xf32> to vector<8x32xf32>
    %55 = vector.extract_strided_slice %43 {offsets = [0, 96], sizes = [8, 32], strides = [1, 1]} : vector<8x128xf32> to vector<8x32xf32>
    %cst_19 = arith.constant 5.000000e-01 : f32
    %56 = vector.broadcast %cst_19 : f32 to vector<8x32xf32>
    %57 = arith.mulf %56, %55 : vector<8x32xf32>
    %cst_20 = arith.constant 5.000000e-01 : f32
    %58 = vector.broadcast %cst_20 : f32 to vector<8x32xf32>
    %59 = arith.addf %57, %58 : vector<8x32xf32>
    %60 = arith.mulf %53, %35 : vector<8x32xf32>
    %61 = arith.mulf %48, %54 : vector<8x32xf32>
    %62 = arith.addf %60, %61 : vector<8x32xf32>
    %63 = math.tanh %62 : vector<8x32xf32>
    %64 = arith.mulf %59, %63 : vector<8x32xf32>
    %65 = vector.extract_strided_slice %2 {offsets = [16, 0], sizes = [8, 128], strides = [1, 1]} : vector<64x128xf32> to vector<8x128xf32>
    %66 = arith.truncf %64 : vector<8x32xf32> to vector<8x32xbf16>
    %cst_21 = arith.constant dense<0.000000e+00> : vector<8x128xf32>
    %67 = tpu.matmul %66, %3, %cst_21 {dimension_numbers = #tpu.dot_dimension_numbers<[1], [0], [0], [1], [0, 0, 1, 1], [], []>} : vector<8x32xbf16>, vector<32x128xbf16>, vector<8x128xf32> -> vector<8x128xf32>
    %68 = arith.addf %65, %67 : vector<8x128xf32>
    %69 = arith.mulf %68, %12 : vector<8x128xf32>
    %70 = math.tanh %69 : vector<8x128xf32>
    %71 = vector.extract_strided_slice %70 {offsets = [0, 0], sizes = [8, 32], strides = [1, 1]} : vector<8x128xf32> to vector<8x32xf32>
    %cst_22 = arith.constant 5.000000e-01 : f32
    %72 = vector.broadcast %cst_22 : f32 to vector<8x32xf32>
    %73 = arith.mulf %72, %71 : vector<8x32xf32>
    %cst_23 = arith.constant 5.000000e-01 : f32
    %74 = vector.broadcast %cst_23 : f32 to vector<8x32xf32>
    %75 = arith.addf %73, %74 : vector<8x32xf32>
    %76 = vector.extract_strided_slice %70 {offsets = [0, 32], sizes = [8, 32], strides = [1, 1]} : vector<8x128xf32> to vector<8x32xf32>
    %cst_24 = arith.constant 5.000000e-01 : f32
    %77 = vector.broadcast %cst_24 : f32 to vector<8x32xf32>
    %78 = arith.mulf %77, %76 : vector<8x32xf32>
    %cst_25 = arith.constant 5.000000e-01 : f32
    %79 = vector.broadcast %cst_25 : f32 to vector<8x32xf32>
    %80 = arith.addf %78, %79 : vector<8x32xf32>
    %81 = vector.extract_strided_slice %70 {offsets = [0, 64], sizes = [8, 32], strides = [1, 1]} : vector<8x128xf32> to vector<8x32xf32>
    %82 = vector.extract_strided_slice %70 {offsets = [0, 96], sizes = [8, 32], strides = [1, 1]} : vector<8x128xf32> to vector<8x32xf32>
    %cst_26 = arith.constant 5.000000e-01 : f32
    %83 = vector.broadcast %cst_26 : f32 to vector<8x32xf32>
    %84 = arith.mulf %83, %82 : vector<8x32xf32>
    %cst_27 = arith.constant 5.000000e-01 : f32
    %85 = vector.broadcast %cst_27 : f32 to vector<8x32xf32>
    %86 = arith.addf %84, %85 : vector<8x32xf32>
    %87 = arith.mulf %80, %62 : vector<8x32xf32>
    %88 = arith.mulf %75, %81 : vector<8x32xf32>
    %89 = arith.addf %87, %88 : vector<8x32xf32>
    %90 = math.tanh %89 : vector<8x32xf32>
    %91 = arith.mulf %86, %90 : vector<8x32xf32>
    %92 = vector.extract_strided_slice %2 {offsets = [24, 0], sizes = [8, 128], strides = [1, 1]} : vector<64x128xf32> to vector<8x128xf32>
    %93 = arith.truncf %91 : vector<8x32xf32> to vector<8x32xbf16>
    %cst_28 = arith.constant dense<0.000000e+00> : vector<8x128xf32>
    %94 = tpu.matmul %93, %3, %cst_28 {dimension_numbers = #tpu.dot_dimension_numbers<[1], [0], [0], [1], [0, 0, 1, 1], [], []>} : vector<8x32xbf16>, vector<32x128xbf16>, vector<8x128xf32> -> vector<8x128xf32>
    %95 = arith.addf %92, %94 : vector<8x128xf32>
    %96 = arith.mulf %95, %12 : vector<8x128xf32>
    %97 = math.tanh %96 : vector<8x128xf32>
    %98 = vector.extract_strided_slice %97 {offsets = [0, 0], sizes = [8, 32], strides = [1, 1]} : vector<8x128xf32> to vector<8x32xf32>
    %cst_29 = arith.constant 5.000000e-01 : f32
    %99 = vector.broadcast %cst_29 : f32 to vector<8x32xf32>
    %100 = arith.mulf %99, %98 : vector<8x32xf32>
    %cst_30 = arith.constant 5.000000e-01 : f32
    %101 = vector.broadcast %cst_30 : f32 to vector<8x32xf32>
    %102 = arith.addf %100, %101 : vector<8x32xf32>
    %103 = vector.extract_strided_slice %97 {offsets = [0, 32], sizes = [8, 32], strides = [1, 1]} : vector<8x128xf32> to vector<8x32xf32>
    %cst_31 = arith.constant 5.000000e-01 : f32
    %104 = vector.broadcast %cst_31 : f32 to vector<8x32xf32>
    %105 = arith.mulf %104, %103 : vector<8x32xf32>
    %cst_32 = arith.constant 5.000000e-01 : f32
    %106 = vector.broadcast %cst_32 : f32 to vector<8x32xf32>
    %107 = arith.addf %105, %106 : vector<8x32xf32>
    %108 = vector.extract_strided_slice %97 {offsets = [0, 64], sizes = [8, 32], strides = [1, 1]} : vector<8x128xf32> to vector<8x32xf32>
    %109 = vector.extract_strided_slice %97 {offsets = [0, 96], sizes = [8, 32], strides = [1, 1]} : vector<8x128xf32> to vector<8x32xf32>
    %cst_33 = arith.constant 5.000000e-01 : f32
    %110 = vector.broadcast %cst_33 : f32 to vector<8x32xf32>
    %111 = arith.mulf %110, %109 : vector<8x32xf32>
    %cst_34 = arith.constant 5.000000e-01 : f32
    %112 = vector.broadcast %cst_34 : f32 to vector<8x32xf32>
    %113 = arith.addf %111, %112 : vector<8x32xf32>
    %114 = arith.mulf %107, %89 : vector<8x32xf32>
    %115 = arith.mulf %102, %108 : vector<8x32xf32>
    %116 = arith.addf %114, %115 : vector<8x32xf32>
    %117 = math.tanh %116 : vector<8x32xf32>
    %118 = arith.mulf %113, %117 : vector<8x32xf32>
    %119 = vector.extract_strided_slice %2 {offsets = [32, 0], sizes = [8, 128], strides = [1, 1]} : vector<64x128xf32> to vector<8x128xf32>
    %120 = arith.truncf %118 : vector<8x32xf32> to vector<8x32xbf16>
    %cst_35 = arith.constant dense<0.000000e+00> : vector<8x128xf32>
    %121 = tpu.matmul %120, %3, %cst_35 {dimension_numbers = #tpu.dot_dimension_numbers<[1], [0], [0], [1], [0, 0, 1, 1], [], []>} : vector<8x32xbf16>, vector<32x128xbf16>, vector<8x128xf32> -> vector<8x128xf32>
    %122 = arith.addf %119, %121 : vector<8x128xf32>
    %123 = arith.mulf %122, %12 : vector<8x128xf32>
    %124 = math.tanh %123 : vector<8x128xf32>
    %125 = vector.extract_strided_slice %124 {offsets = [0, 0], sizes = [8, 32], strides = [1, 1]} : vector<8x128xf32> to vector<8x32xf32>
    %cst_36 = arith.constant 5.000000e-01 : f32
    %126 = vector.broadcast %cst_36 : f32 to vector<8x32xf32>
    %127 = arith.mulf %126, %125 : vector<8x32xf32>
    %cst_37 = arith.constant 5.000000e-01 : f32
    %128 = vector.broadcast %cst_37 : f32 to vector<8x32xf32>
    %129 = arith.addf %127, %128 : vector<8x32xf32>
    %130 = vector.extract_strided_slice %124 {offsets = [0, 32], sizes = [8, 32], strides = [1, 1]} : vector<8x128xf32> to vector<8x32xf32>
    %cst_38 = arith.constant 5.000000e-01 : f32
    %131 = vector.broadcast %cst_38 : f32 to vector<8x32xf32>
    %132 = arith.mulf %131, %130 : vector<8x32xf32>
    %cst_39 = arith.constant 5.000000e-01 : f32
    %133 = vector.broadcast %cst_39 : f32 to vector<8x32xf32>
    %134 = arith.addf %132, %133 : vector<8x32xf32>
    %135 = vector.extract_strided_slice %124 {offsets = [0, 64], sizes = [8, 32], strides = [1, 1]} : vector<8x128xf32> to vector<8x32xf32>
    %136 = vector.extract_strided_slice %124 {offsets = [0, 96], sizes = [8, 32], strides = [1, 1]} : vector<8x128xf32> to vector<8x32xf32>
    %cst_40 = arith.constant 5.000000e-01 : f32
    %137 = vector.broadcast %cst_40 : f32 to vector<8x32xf32>
    %138 = arith.mulf %137, %136 : vector<8x32xf32>
    %cst_41 = arith.constant 5.000000e-01 : f32
    %139 = vector.broadcast %cst_41 : f32 to vector<8x32xf32>
    %140 = arith.addf %138, %139 : vector<8x32xf32>
    %141 = arith.mulf %134, %116 : vector<8x32xf32>
    %142 = arith.mulf %129, %135 : vector<8x32xf32>
    %143 = arith.addf %141, %142 : vector<8x32xf32>
    %144 = math.tanh %143 : vector<8x32xf32>
    %145 = arith.mulf %140, %144 : vector<8x32xf32>
    %146 = vector.extract_strided_slice %2 {offsets = [40, 0], sizes = [8, 128], strides = [1, 1]} : vector<64x128xf32> to vector<8x128xf32>
    %147 = arith.truncf %145 : vector<8x32xf32> to vector<8x32xbf16>
    %cst_42 = arith.constant dense<0.000000e+00> : vector<8x128xf32>
    %148 = tpu.matmul %147, %3, %cst_42 {dimension_numbers = #tpu.dot_dimension_numbers<[1], [0], [0], [1], [0, 0, 1, 1], [], []>} : vector<8x32xbf16>, vector<32x128xbf16>, vector<8x128xf32> -> vector<8x128xf32>
    %149 = arith.addf %146, %148 : vector<8x128xf32>
    %150 = arith.mulf %149, %12 : vector<8x128xf32>
    %151 = math.tanh %150 : vector<8x128xf32>
    %152 = vector.extract_strided_slice %151 {offsets = [0, 0], sizes = [8, 32], strides = [1, 1]} : vector<8x128xf32> to vector<8x32xf32>
    %cst_43 = arith.constant 5.000000e-01 : f32
    %153 = vector.broadcast %cst_43 : f32 to vector<8x32xf32>
    %154 = arith.mulf %153, %152 : vector<8x32xf32>
    %cst_44 = arith.constant 5.000000e-01 : f32
    %155 = vector.broadcast %cst_44 : f32 to vector<8x32xf32>
    %156 = arith.addf %154, %155 : vector<8x32xf32>
    %157 = vector.extract_strided_slice %151 {offsets = [0, 32], sizes = [8, 32], strides = [1, 1]} : vector<8x128xf32> to vector<8x32xf32>
    %cst_45 = arith.constant 5.000000e-01 : f32
    %158 = vector.broadcast %cst_45 : f32 to vector<8x32xf32>
    %159 = arith.mulf %158, %157 : vector<8x32xf32>
    %cst_46 = arith.constant 5.000000e-01 : f32
    %160 = vector.broadcast %cst_46 : f32 to vector<8x32xf32>
    %161 = arith.addf %159, %160 : vector<8x32xf32>
    %162 = vector.extract_strided_slice %151 {offsets = [0, 64], sizes = [8, 32], strides = [1, 1]} : vector<8x128xf32> to vector<8x32xf32>
    %163 = vector.extract_strided_slice %151 {offsets = [0, 96], sizes = [8, 32], strides = [1, 1]} : vector<8x128xf32> to vector<8x32xf32>
    %cst_47 = arith.constant 5.000000e-01 : f32
    %164 = vector.broadcast %cst_47 : f32 to vector<8x32xf32>
    %165 = arith.mulf %164, %163 : vector<8x32xf32>
    %cst_48 = arith.constant 5.000000e-01 : f32
    %166 = vector.broadcast %cst_48 : f32 to vector<8x32xf32>
    %167 = arith.addf %165, %166 : vector<8x32xf32>
    %168 = arith.mulf %161, %143 : vector<8x32xf32>
    %169 = arith.mulf %156, %162 : vector<8x32xf32>
    %170 = arith.addf %168, %169 : vector<8x32xf32>
    %171 = math.tanh %170 : vector<8x32xf32>
    %172 = arith.mulf %167, %171 : vector<8x32xf32>
    %173 = vector.extract_strided_slice %2 {offsets = [48, 0], sizes = [8, 128], strides = [1, 1]} : vector<64x128xf32> to vector<8x128xf32>
    %174 = arith.truncf %172 : vector<8x32xf32> to vector<8x32xbf16>
    %cst_49 = arith.constant dense<0.000000e+00> : vector<8x128xf32>
    %175 = tpu.matmul %174, %3, %cst_49 {dimension_numbers = #tpu.dot_dimension_numbers<[1], [0], [0], [1], [0, 0, 1, 1], [], []>} : vector<8x32xbf16>, vector<32x128xbf16>, vector<8x128xf32> -> vector<8x128xf32>
    %176 = arith.addf %173, %175 : vector<8x128xf32>
    %177 = arith.mulf %176, %12 : vector<8x128xf32>
    %178 = math.tanh %177 : vector<8x128xf32>
    %179 = vector.extract_strided_slice %178 {offsets = [0, 0], sizes = [8, 32], strides = [1, 1]} : vector<8x128xf32> to vector<8x32xf32>
    %cst_50 = arith.constant 5.000000e-01 : f32
    %180 = vector.broadcast %cst_50 : f32 to vector<8x32xf32>
    %181 = arith.mulf %180, %179 : vector<8x32xf32>
    %cst_51 = arith.constant 5.000000e-01 : f32
    %182 = vector.broadcast %cst_51 : f32 to vector<8x32xf32>
    %183 = arith.addf %181, %182 : vector<8x32xf32>
    %184 = vector.extract_strided_slice %178 {offsets = [0, 32], sizes = [8, 32], strides = [1, 1]} : vector<8x128xf32> to vector<8x32xf32>
    %cst_52 = arith.constant 5.000000e-01 : f32
    %185 = vector.broadcast %cst_52 : f32 to vector<8x32xf32>
    %186 = arith.mulf %185, %184 : vector<8x32xf32>
    %cst_53 = arith.constant 5.000000e-01 : f32
    %187 = vector.broadcast %cst_53 : f32 to vector<8x32xf32>
    %188 = arith.addf %186, %187 : vector<8x32xf32>
    %189 = vector.extract_strided_slice %178 {offsets = [0, 64], sizes = [8, 32], strides = [1, 1]} : vector<8x128xf32> to vector<8x32xf32>
    %190 = vector.extract_strided_slice %178 {offsets = [0, 96], sizes = [8, 32], strides = [1, 1]} : vector<8x128xf32> to vector<8x32xf32>
    %cst_54 = arith.constant 5.000000e-01 : f32
    %191 = vector.broadcast %cst_54 : f32 to vector<8x32xf32>
    %192 = arith.mulf %191, %190 : vector<8x32xf32>
    %cst_55 = arith.constant 5.000000e-01 : f32
    %193 = vector.broadcast %cst_55 : f32 to vector<8x32xf32>
    %194 = arith.addf %192, %193 : vector<8x32xf32>
    %195 = arith.mulf %188, %170 : vector<8x32xf32>
    %196 = arith.mulf %183, %189 : vector<8x32xf32>
    %197 = arith.addf %195, %196 : vector<8x32xf32>
    %198 = math.tanh %197 : vector<8x32xf32>
    %199 = arith.mulf %194, %198 : vector<8x32xf32>
    %200 = vector.extract_strided_slice %2 {offsets = [56, 0], sizes = [8, 128], strides = [1, 1]} : vector<64x128xf32> to vector<8x128xf32>
    %201 = arith.truncf %199 : vector<8x32xf32> to vector<8x32xbf16>
    %cst_56 = arith.constant dense<0.000000e+00> : vector<8x128xf32>
    %202 = tpu.matmul %201, %3, %cst_56 {dimension_numbers = #tpu.dot_dimension_numbers<[1], [0], [0], [1], [0, 0, 1, 1], [], []>} : vector<8x32xbf16>, vector<32x128xbf16>, vector<8x128xf32> -> vector<8x128xf32>
    %203 = arith.addf %200, %202 : vector<8x128xf32>
    %204 = arith.mulf %203, %12 : vector<8x128xf32>
    %205 = math.tanh %204 : vector<8x128xf32>
    %206 = vector.extract_strided_slice %205 {offsets = [0, 0], sizes = [8, 32], strides = [1, 1]} : vector<8x128xf32> to vector<8x32xf32>
    %cst_57 = arith.constant 5.000000e-01 : f32
    %207 = vector.broadcast %cst_57 : f32 to vector<8x32xf32>
    %208 = arith.mulf %207, %206 : vector<8x32xf32>
    %cst_58 = arith.constant 5.000000e-01 : f32
    %209 = vector.broadcast %cst_58 : f32 to vector<8x32xf32>
    %210 = arith.addf %208, %209 : vector<8x32xf32>
    %211 = vector.extract_strided_slice %205 {offsets = [0, 32], sizes = [8, 32], strides = [1, 1]} : vector<8x128xf32> to vector<8x32xf32>
    %cst_59 = arith.constant 5.000000e-01 : f32
    %212 = vector.broadcast %cst_59 : f32 to vector<8x32xf32>
    %213 = arith.mulf %212, %211 : vector<8x32xf32>
    %cst_60 = arith.constant 5.000000e-01 : f32
    %214 = vector.broadcast %cst_60 : f32 to vector<8x32xf32>
    %215 = arith.addf %213, %214 : vector<8x32xf32>
    %216 = vector.extract_strided_slice %205 {offsets = [0, 64], sizes = [8, 32], strides = [1, 1]} : vector<8x128xf32> to vector<8x32xf32>
    %217 = vector.extract_strided_slice %205 {offsets = [0, 96], sizes = [8, 32], strides = [1, 1]} : vector<8x128xf32> to vector<8x32xf32>
    %cst_61 = arith.constant 5.000000e-01 : f32
    %218 = vector.broadcast %cst_61 : f32 to vector<8x32xf32>
    %219 = arith.mulf %218, %217 : vector<8x32xf32>
    %cst_62 = arith.constant 5.000000e-01 : f32
    %220 = vector.broadcast %cst_62 : f32 to vector<8x32xf32>
    %221 = arith.addf %219, %220 : vector<8x32xf32>
    %222 = arith.mulf %215, %197 : vector<8x32xf32>
    %223 = arith.mulf %210, %216 : vector<8x32xf32>
    %224 = arith.addf %222, %223 : vector<8x32xf32>
    %225 = math.tanh %224 : vector<8x32xf32>
    %226 = arith.mulf %221, %225 : vector<8x32xf32>
    %c0_63 = arith.constant 0 : index
    %c0_64 = arith.constant 0 : index
    %227 = vector.load %arg3[%c0_63, %c0_64] : memref<1x33xf32, #tpu.memory_space<vmem>>, vector<1x32xf32>
    %c0_65 = arith.constant 0 : index
    %c32 = arith.constant 32 : index
    %228 = vector.load %arg3[%c0_65, %c32] : memref<1x33xf32, #tpu.memory_space<vmem>>, vector<1x1xf32>
    %229 = vector.broadcast %227 : vector<1x32xf32> to vector<8x32xf32>
    %230 = arith.mulf %226, %229 : vector<8x32xf32>
    %cst_66 = arith.constant dense<0.000000e+00> : vector<8xf32>
    %231 = vector.multi_reduction <add>, %230, %cst_66 [1] : vector<8x32xf32> to vector<8xf32>
    %232 = vector.shape_cast %231 : vector<8xf32> to vector<8x1xf32>
    %233 = vector.broadcast %228 : vector<1x1xf32> to vector<8x1xf32>
    %234 = arith.addf %232, %233 : vector<8x1xf32>
    %c0_67 = arith.constant 0 : index
    %c0_68 = arith.constant 0 : index
    %235 = vector.load %arg4[%c0_67, %c0_68] : memref<8x1xf32, #tpu.memory_space<vmem>>, vector<8x1xf32>
    tpu.vector_store %arg4[%c0_67, %c0_68], %234 {strides = array<i32>} : memref<8x1xf32, #tpu.memory_space<vmem>>, vector<8x1xf32>,
    return
  }
}

</mosaic_0001>

<bundles_post_ra>
// kernel: lstm_regression_pallas.1
= control target key start
LH: loop header
LB: loop body
LE: loop exit
PB: predicated region body
PF: predicated region fallthrough
CT: control target
= control target key end

     0   :  { %vm71_vm0 = vcmask 1040384   ;;  %v860_v1 = vmov 0   ;;  %vm58_vm1 = vcmask 138240   ;;  %v146_v7 = vlaneseq  ;;  %s863_s23 = smov 32   ;;  %s866_s6 = smov 96   ;;  %s1034_s1 = inlined_call_operand.vmem [shape: bf16[17,128], index: 1, kind: input, shape index: {}]   ;;  %s1035_s0 = inlined_call_operand.vmem [shape: bf16[64,17], index: 0, kind: input, shape index: {}]   ;;  %s1036_s2 = inlined_call_operand.vmem [shape: bf16[32,128], index: 2, kind: input, shape index: {}]   ;;  %s1037_s3 = inlined_call_operand.vmem [shape: f32[1,33], index: 3, kind: input, shape index: {}]   ;;  %s1038_s4 = inlined_call_operand.vmem [shape: f32[8,1], index: 4, kind: output, shape index: {}]  }
   0x1   :  { %v820_v0 = vld [vmem:[%s1034_s1 + $0x8] ss:$0 sps:$4 sm:$0x11]   ;;  %v73_v2 = vsel %vm71_vm0, 65535, %v860_v1  ;;  %v821_v3 = vld [vmem:[%s1034_s1] sm:$0xff]   ;;  %v861_v10 = vmov 0.5  }
   0x2   :  { %v75_v4 = vand.u32 %v820_v0, %v73_v2  ;;  %v822_v5 = vld [vmem:[%s1035_s0] sm:$0xff]   ;;  %v823_v6 = vld [vmem:[%s1035_s0 + $0x8] sm:$0xff]   ;;  %v147_v8 = vand.u32 127, %v146_v7  ;;  %s862_s1 = smov 64   ;;  %v864_v22 = vmov 0.0   ;;  %vm865_vm5 = vmmov 0  }
   0x3   :  { %749 = vmatprep.mubr.msk.bf16.mxu0 %vm58_vm1, %v822_v5  ;;  %757 = vmatprep.subr.bf16.mxu1 %v864_v22  ;;  %v917_v23 = vld [vmem:[%s1036_s2 + $0x8] sm:$0xff]   ;;  %v926_v24 = vld [vmem:[%s1036_s2] sm:$0xff]   ;;  %vm189_vm6 = vcmask 261120   ;;  %v826_v1 = vld [vmem:[%s1035_s0 + $0x10] sm:$0xff]   ;;  %vm692_vm7 = vcmask 7168  }
   0x4   :  { %745 = vmatprep.subr.bf16.mxu0 %v75_v4  ;;  %vm148_vm2 = vcmp.ge.s32.totalorder %v147_v8, 64  ;;  %vm149_vm3 = vcmp.lt.s32.totalorder %v147_v8, 96  ;;  %761 = vmatprep.mubr.msk.bf16.mxu1 %vm865_vm5, %v864_v22  ;;  %v827_v2 = vld [vmem:[%s1035_s0 + $0x18] sm:$0xff]  }
   0x5   :  { %746 = vmatpush3.bf16.msra.mxu0 %v75_v4  ;;  %vm150_vm4 = vmand %vm148_vm2, %vm149_vm3  ;;  %758 = vmatpush3.bf16.msra.mxu1 %v917_v23 }
   0x6   :  { %747 = vmatprep.subr.bf16.mxu0 %v821_v3  ;;  %v908_v11 = vsel %vm150_vm4, 1.0, %v861_v10  ;;  %759 = vmatprep.subr.bf16.mxu1 %v864_v22 }
   0x9   :  { %748 = vmatpush3.bf16.msra.mxu0 %v821_v3  ;;  %760 = vmatpush3.bf16.msra.mxu1 %v926_v24 }
   0xa   :  { %773 = vmatprep.subr.bf16.mxu0 %v864_v22  ;;  %765 = vmatprep.subr.bf16.mxu1 %v864_v22 }
   0xc   :  { %750 = vmatmul.mubr.msk.bf16.vlgmr.msra.gmra.mxu0 %vm58_vm1, %v823_v6 }
   0xd   :  { %774 = vmatpush3.bf16.msra.mxu0 %v917_v23  ;;  %753 = vmatprep.mubr.msk.bf16.mxu0 %vm58_vm1, %v826_v1 }
   0xe   :  { %775 = vmatprep.subr.bf16.mxu0 %v864_v22 }
  0x11   :  { %776 = vmatpush3.bf16.msra.mxu0 %v926_v24 }
  0x12   :  { %789 = vmatprep.subr.bf16.mxu0 %v864_v22 }
  0x14   :  { %754 = vmatmul.mubr.msk.bf16.gmra.mxu0 %vm58_vm1, %v827_v2 }
  0x15   :  { %777 = vmatprep.mubr.msk.bf16.mxu0 %vm865_vm5, %v864_v22 }
  0xcc   :  { %v906_v9 = vpop.f32.mrf.mxu0 }
  0xce   :  { %v111_v12 = vpop.f32.mrf.mxu0 }
  0xcf   :  { %v152_v13 = vmul.f32 %v908_v11, %v111_v12 }
  0xd0   :  { %v944_v30 = vpop.f32.mrf.mxu0 }
  0xd1   :  { %828 = vtanh.f32 %v152_v13 }
  0xd2   :  { %v114_v31 = vpop.f32.mrf.mxu0 }
  0xd4   :  { %v981_v8 = vpop.f32.mrf.mxu0 }
  0xde   :  { %v829_v14 = vpop.eup %828 }
  0xdf   :  { %158 = vrot.lane.b32.xlu0 %v829_v14, %s862_s1  ;;  %v154_v15 = vmul.f32 0.5, %v829_v14 }
  0xe1   :  { %v155_v16 = vadd.f32 0.5, %v154_v15 }
  0xe3   :  { %v156_v19 = vmul.f32 0.0, %v155_v16 }
 0x151   :  { %v159_v17 = vpop.permute.xlu0 %158 }
 0x152   :  { %v161_v18 = vmul.f32 %v159_v17, %v155_v16 }
 0x154   :  { %163 = vrot.lane.b32.xlu0 %v161_v18, %s863_s23 }
 0x1c6   :  { %v164_v20 = vpop.permute.xlu0 %163 }
 0x1c7   :  { %v166_v21 = vadd.f32 %v164_v20, %v156_v19 }
 0x1c9   :  { %830 = vtanh.f32 %v166_v21 }
 0x1d6   :  { %v831_v25 = vpop.eup %830 }
 0x1d7   :  { %169 = vrot.lane.b32.xlu1 %v831_v25, %s862_s1 }
 0x249   :  { %v170_v26 = vpop.permute.xlu1 %169 }
 0x24a   :  { %v172_v27 = vmul.f32 %v170_v26, %v155_v16 }
 0x24c   :  { %v173_v28 = vpack.c.bf16 %v172_v27, %v172_v27 }
 0x24e   :  { %175 = vrot.lane.b32.xlu1 %v173_v28, %s863_s23 }
 0x2c0   :  { %v176_v29 = vpop.permute.xlu1 %175 }
 0x2c1   :  { %762 = vmatmul.mubr.msk.bf16.vlgmr.msra.gmra.mxu1 %vm189_vm6, %v176_v29 }
 0x2c2   :  { %766 = vmatpush3.bf16.msra.mxu1 %v917_v23  ;;  %769 = vmatprep.mubr.msk.bf16.mxu1 %vm865_vm5, %v864_v22 }
 0x2c3   :  { %767 = vmatprep.subr.bf16.mxu1 %v864_v22 }
 0x2c6   :  { %768 = vmatpush3.bf16.msra.mxu1 %v926_v24 }
 0x2c7   :  { %781 = vmatprep.subr.bf16.mxu1 %v864_v22 }
 0x381   :  { %v227_v32 = vpop.f32.mrf.mxu1 }
 0x382   :  { %v233_v33 = vadd.f32 %v227_v32, %v114_v31 }
 0x383   :  { %v763_v34 = vpop.f32.mrf.mxu1 }
 0x384   :  { %v234_v35 = vmul.f32 %v233_v33, %v908_v11 }
 0x385   :  { %v230_v36 = vpop.f32.mrf.mxu1 }
 0x386   :  { %832 = vtanh.f32 %v234_v35 }
 0x387   :  { %v764_v37 = vpop.f32.mrf.mxu1 }
 0x393   :  { %v833_v38 = vpop.eup %832 }
 0x394   :  { %240 = vrot.lane.b32.xlu0 %v833_v38, %s862_s1  ;;  %v236_v39 = vmul.f32 0.5, %v833_v38 }
 0x396   :  { %v237_v40 = vadd.f32 0.5, %v236_v39 }
 0x398   :  { %v238_v43 = vmul.f32 %v237_v40, %v166_v21 }
 0x406   :  { %v241_v41 = vpop.permute.xlu0 %240 }
 0x407   :  { %v243_v42 = vmul.f32 %v241_v41, %v237_v40 }
 0x409   :  { %245 = vrot.lane.b32.xlu1 %v243_v42, %s863_s23 }
 0x47b   :  { %v246_v44 = vpop.permute.xlu1 %245 }
 0x47c   :  { %v248_v45 = vadd.f32 %v246_v44, %v238_v43 }
 0x47e   :  { %834 = vtanh.f32 %v248_v45 }
 0x48b   :  { %v835_v46 = vpop.eup %834 }
 0x48c   :  { %251 = vrot.lane.b32.xlu0 %v835_v46, %s862_s1 }
 0x4fe   :  { %v252_v47 = vpop.permute.xlu0 %251 }
 0x4ff   :  { %v254_v48 = vmul.f32 %v252_v47, %v237_v40 }
 0x501   :  { %v255_v49 = vpack.c.bf16 %v254_v48, %v254_v48 }
 0x503   :  { %257 = vrot.lane.b32.xlu1 %v255_v49, %s863_s23 }
 0x575   :  { %v258_v50 = vpop.permute.xlu1 %257 }
 0x576   :  { %770 = vmatmul.mubr.msk.bf16.vlgmr.msra.gmra.mxu1 %vm189_vm6, %v258_v50 }
 0x577   :  { %782 = vmatpush3.bf16.msra.mxu1 %v917_v23  ;;  %785 = vmatprep.mubr.msk.bf16.mxu1 %vm865_vm5, %v864_v22 }
 0x578   :  { %783 = vmatprep.subr.bf16.mxu1 %v864_v22 }
 0x57b   :  { %784 = vmatpush3.bf16.msra.mxu1 %v926_v24 }
 0x57c   :  { %797 = vmatprep.subr.bf16.mxu1 %v864_v22 }
 0x636   :  { %v296_v51 = vpop.f32.mrf.mxu1 }
 0x637   :  { %v302_v52 = vadd.f32 %v906_v9, %v296_v51  ;;  %v127_v9 = vpop.f32.mrf.mxu0 }
 0x638   :  { %v771_v53 = vpop.f32.mrf.mxu1 }
 0x639   :  { %v303_v54 = vmul.f32 %v302_v52, %v908_v11  ;;  %v983_v10 = vpop.f32.mrf.mxu0 }
 0x63a   :  { %v299_v55 = vpop.f32.mrf.mxu1 }
 0x63b   :  { %836 = vtanh.f32 %v303_v54  ;;  %v130_v12 = vpop.f32.mrf.mxu0 }
 0x63c   :  { %v772_v56 = vpop.f32.mrf.mxu1 }
 0x648   :  { %v837_v57 = vpop.eup %836 }
 0x649   :  { %309 = vrot.lane.b32.xlu0 %v837_v57, %s862_s1  ;;  %v305_v58 = vmul.f32 0.5, %v837_v57 }
 0x64b   :  { %v306_v59 = vadd.f32 0.5, %v305_v58 }
 0x64d   :  { %v307_v62 = vmul.f32 %v306_v59, %v248_v45 }
 0x6bb   :  { %v310_v60 = vpop.permute.xlu0 %309 }
 0x6bc   :  { %v312_v61 = vmul.f32 %v310_v60, %v306_v59 }
 0x6be   :  { %314 = vrot.lane.b32.xlu1 %v312_v61, %s863_s23 }
 0x730   :  { %v315_v63 = vpop.permute.xlu1 %314 }
 0x731   :  { %v317_v0 = vadd.f32 %v315_v63, %v307_v62 }
 0x733   :  { %838 = vtanh.f32 %v317_v0 }
 0x740   :  { %v839_v3 = vpop.eup %838 }
 0x741   :  { %320 = vrot.lane.b32.xlu0 %v839_v3, %s862_s1 }
 0x7b3   :  { %v321_v4 = vpop.permute.xlu0 %320 }
 0x7b4   :  { %v323_v5 = vmul.f32 %v321_v4, %v306_v59 }
 0x7b6   :  { %v324_v6 = vpack.c.bf16 %v323_v5, %v323_v5 }
 0x7b8   :  { %326 = vrot.lane.b32.xlu1 %v324_v6, %s863_s23 }
 0x82a   :  { %v327_v7 = vpop.permute.xlu1 %326 }
 0x82b   :  { %778 = vmatmul.mubr.msk.bf16.vlgmr.msra.gmra.mxu0 %vm189_vm6, %v327_v7 }
 0x82c   :  { %790 = vmatpush3.bf16.msra.mxu0 %v917_v23  ;;  %793 = vmatprep.mubr.msk.bf16.mxu0 %vm865_vm5, %v864_v22 }
 0x82d   :  { %791 = vmatprep.subr.bf16.mxu0 %v864_v22 }
 0x830   :  { %792 = vmatpush3.bf16.msra.mxu0 %v926_v24 }
 0x831   :  { %805 = vmatprep.subr.bf16.mxu0 %v864_v22 }
 0x8eb   :  { %v365_v13 = vpop.f32.mrf.mxu0 }
 0x8ec   :  { %v371_v14 = vadd.f32 %v944_v30, %v365_v13 }
 0x8ed   :  { %v779_v15 = vpop.f32.mrf.mxu0 }
 0x8ee   :  { %v372_v16 = vmul.f32 %v371_v14, %v908_v11 }
 0x8ef   :  { %v368_v17 = vpop.f32.mrf.mxu0 }
 0x8f0   :  { %840 = vtanh.f32 %v372_v16 }
 0x8f1   :  { %v780_v18 = vpop.f32.mrf.mxu0 }
 0x8fd   :  { %v841_v19 = vpop.eup %840 }
 0x8fe   :  { %378 = vrot.lane.b32.xlu0 %v841_v19, %s862_s1  ;;  %v374_v20 = vmul.f32 0.5, %v841_v19 }
 0x900   :  { %v375_v21 = vadd.f32 0.5, %v374_v20 }
 0x902   :  { %v376_v27 = vmul.f32 %v375_v21, %v317_v0 }
 0x970   :  { %v379_v25 = vpop.permute.xlu0 %378 }
 0x971   :  { %v381_v26 = vmul.f32 %v379_v25, %v375_v21 }
 0x973   :  { %383 = vrot.lane.b32.xlu1 %v381_v26, %s863_s23 }
 0x9e5   :  { %v384_v28 = vpop.permute.xlu1 %383 }
 0x9e6   :  { %v386_v29 = vadd.f32 %v384_v28, %v376_v27 }
 0x9e8   :  { %842 = vtanh.f32 %v386_v29 }
 0x9f5   :  { %v843_v30 = vpop.eup %842 }
 0x9f6   :  { %389 = vrot.lane.b32.xlu0 %v843_v30, %s862_s1 }
 0xa68   :  { %v390_v31 = vpop.permute.xlu0 %389 }
 0xa69   :  { %v392_v32 = vmul.f32 %v390_v31, %v375_v21 }
 0xa6b   :  { %v393_v33 = vpack.c.bf16 %v392_v32, %v392_v32 }
 0xa6d   :  { %395 = vrot.lane.b32.xlu1 %v393_v33, %s863_s23 }
 0xadf   :  { %v396_v34 = vpop.permute.xlu1 %395 }
 0xae0   :  { %786 = vmatmul.mubr.msk.bf16.vlgmr.msra.gmra.mxu1 %vm189_vm6, %v396_v34 }
 0xae1   :  { %798 = vmatpush3.bf16.msra.mxu1 %v917_v23  ;;  %801 = vmatprep.mubr.msk.bf16.mxu1 %vm865_vm5, %v864_v22 }
 0xae2   :  { %799 = vmatprep.subr.bf16.mxu1 %v864_v22 }
 0xae5   :  { %800 = vmatpush3.bf16.msra.mxu1 %v926_v24 }
 0xba0   :  { %v434_v35 = vpop.f32.mrf.mxu1 }
 0xba1   :  { %v440_v36 = vadd.f32 %v434_v35, %v127_v9 }
 0xba2   :  { %v787_v37 = vpop.f32.mrf.mxu1 }
 0xba3   :  { %v441_v38 = vmul.f32 %v440_v36, %v908_v11 }
 0xba4   :  { %v437_v39 = vpop.f32.mrf.mxu1 }
 0xba5   :  { %844 = vtanh.f32 %v441_v38 }
 0xba6   :  { %v788_v40 = vpop.f32.mrf.mxu1 }
 0xbb2   :  { %v845_v41 = vpop.eup %844 }
 0xbb3   :  { %447 = vrot.lane.b32.xlu0 %v845_v41, %s862_s1  ;;  %v443_v42 = vmul.f32 0.5, %v845_v41  ;;  %v717_v41 = vld [vmem:[%s1037_s3] ss:$0 sm:$0xff] }
 0xbb5   :  { %v444_v43 = vadd.f32 0.5, %v443_v42 }
 0xbb7   :  { %v445_v46 = vmul.f32 %v444_v43, %v386_v29 }
 0xc25   :  { %v448_v44 = vpop.permute.xlu0 %447 }
 0xc26   :  { %v450_v45 = vmul.f32 %v448_v44, %v444_v43 }
 0xc28   :  { %452 = vrot.lane.b32.xlu1 %v450_v45, %s863_s23 }
 0xc9a   :  { %v453_v47 = vpop.permute.xlu1 %452 }
 0xc9b   :  { %v455_v48 = vadd.f32 %v453_v47, %v445_v46 }
 0xc9d   :  { %846 = vtanh.f32 %v455_v48 }
 0xcaa   :  { %v847_v49 = vpop.eup %846 }
 0xcab   :  { %458 = vrot.lane.b32.xlu0 %v847_v49, %s862_s1 }
 0xd1d   :  { %v459_v50 = vpop.permute.xlu0 %458 }
 0xd1e   :  { %v461_v51 = vmul.f32 %v459_v50, %v444_v43 }
 0xd20   :  { %v462_v52 = vpack.c.bf16 %v461_v51, %v461_v51 }
 0xd22   :  { %464 = vrot.lane.b32.xlu1 %v462_v52, %s863_s23 }
 0xd94   :  { %v465_v53 = vpop.permute.xlu1 %464 }
 0xd95   :  { %794 = vmatmul.mubr.msk.bf16.vlgmr.msra.gmra.mxu0 %vm189_vm6, %v465_v53 }
 0xd96   :  { %806 = vmatpush3.bf16.msra.mxu0 %v917_v23  ;;  %809 = vmatprep.mubr.msk.bf16.mxu0 %vm865_vm5, %v864_v22 }
 0xd97   :  { %807 = vmatprep.subr.bf16.mxu0 %v864_v22 }
 0xd9a   :  { %808 = vmatpush3.bf16.msra.mxu0 %v926_v24 }
 0xe55   :  { %v503_v54 = vpop.f32.mrf.mxu0 }
 0xe56   :  { %v509_v55 = vadd.f32 %v503_v54, %v130_v12 }
 0xe57   :  { %v795_v56 = vpop.f32.mrf.mxu0 }
 0xe58   :  { %v510_v57 = vmul.f32 %v509_v55, %v908_v11 }
 0xe59   :  { %v506_v58 = vpop.f32.mrf.mxu0 }
 0xe5a   :  { %848 = vtanh.f32 %v510_v57 }
 0xe5b   :  { %v796_v59 = vpop.f32.mrf.mxu0 }
 0xe67   :  { %v849_v60 = vpop.eup %848 }
 0xe68   :  { %516 = vrot.lane.b32.xlu0 %v849_v60, %s862_s1  ;;  %v512_v61 = vmul.f32 0.5, %v849_v60 }
 0xe6a   :  { %v513_v23 = vadd.f32 0.5, %v512_v61 }
 0xe6c   :  { %v514_v22 = vmul.f32 %v513_v23, %v455_v48 }
 0xeda   :  { %v517_v62 = vpop.permute.xlu0 %516 }
 0xedb   :  { %v519_v63 = vmul.f32 %v517_v62, %v513_v23 }
 0xedd   :  { %521 = vrot.lane.b32.xlu1 %v519_v63, %s863_s23 }
 0xf4f   :  { %v522_v0 = vpop.permute.xlu1 %521 }
 0xf50   :  { %v524_v24 = vadd.f32 %v522_v0, %v514_v22 }
 0xf52   :  { %850 = vtanh.f32 %v524_v24 }
 0xf5f   :  { %v851_v1 = vpop.eup %850 }
 0xf60   :  { %527 = vrot.lane.b32.xlu0 %v851_v1, %s862_s1 }
 0xfd2   :  { %v528_v2 = vpop.permute.xlu0 %527 }
 0xfd3   :  { %v530_v3 = vmul.f32 %v528_v2, %v513_v23 }
 0xfd5   :  { %v531_v4 = vpack.c.bf16 %v530_v3, %v530_v3 }
 0xfd7   :  { %533 = vrot.lane.b32.xlu1 %v531_v4, %s863_s23 }
0x1049   :  { %v534_v5 = vpop.permute.xlu1 %533 }
0x104a   :  { %802 = vmatmul.mubr.msk.bf16.vlgmr.msra.gmra.mxu1 %vm189_vm6, %v534_v5 }
0x110a   :  { %v572_v6 = vpop.f32.mrf.mxu1 }
0x110b   :  { %v578_v7 = vadd.f32 %v981_v8, %v572_v6 }
0x110c   :  { %v803_v9 = vpop.f32.mrf.mxu1 }
0x110d   :  { %v579_v12 = vmul.f32 %v578_v7, %v908_v11 }
0x110e   :  { %v575_v13 = vpop.f32.mrf.mxu1 }
0x110f   :  { %852 = vtanh.f32 %v579_v12 }
0x1110   :  { %v804_v14 = vpop.f32.mrf.mxu1 }
0x111c   :  { %v853_v15 = vpop.eup %852 }
0x111d   :  { %585 = vrot.lane.b32.xlu0 %v853_v15, %s862_s1  ;;  %v581_v16 = vmul.f32 0.5, %v853_v15 }
0x111f   :  { %v582_v17 = vadd.f32 0.5, %v581_v16 }
0x1121   :  { %v583_v20 = vmul.f32 %v582_v17, %v524_v24 }
0x118f   :  { %v586_v18 = vpop.permute.xlu0 %585 }
0x1190   :  { %v588_v19 = vmul.f32 %v586_v18, %v582_v17 }
0x1192   :  { %590 = vrot.lane.b32.xlu1 %v588_v19, %s863_s23 }
0x1204   :  { %v591_v21 = vpop.permute.xlu1 %590 }
0x1205   :  { %v593_v25 = vadd.f32 %v591_v21, %v583_v20 }
0x1207   :  { %854 = vtanh.f32 %v593_v25 }
0x1214   :  { %v855_v8 = vpop.eup %854 }
0x1215   :  { %596 = vrot.lane.b32.xlu0 %v855_v8, %s862_s1 }
0x1287   :  { %v597_v26 = vpop.permute.xlu0 %596 }
0x1288   :  { %v599_v27 = vmul.f32 %v597_v26, %v582_v17 }
0x128a   :  { %v600_v28 = vpack.c.bf16 %v599_v27, %v599_v27 }
0x128c   :  { %602 = vrot.lane.b32.xlu1 %v600_v28, %s863_s23 }
0x12fe   :  { %v603_v29 = vpop.permute.xlu1 %602 }
0x12ff   :  { %810 = vmatmul.mubr.msk.bf16.vlgmr.msra.gmra.mxu0 %vm189_vm6, %v603_v29 }
0x13bf   :  { %v641_v30 = vpop.f32.mrf.mxu0 }
0x13c0   :  { %v647_v31 = vadd.f32 %v983_v10, %v641_v30 }
0x13c1   :  { %v811_v32 = vpop.f32.mrf.mxu0 }
0x13c2   :  { %v648_v33 = vmul.f32 %v647_v31, %v908_v11 }
0x13c3   :  { %v644_v34 = vpop.f32.mrf.mxu0 }
0x13c4   :  { %856 = vtanh.f32 %v648_v33 }
0x13c5   :  { %v812_v35 = vpop.f32.mrf.mxu0 }
0x13d1   :  { %v857_v36 = vpop.eup %856 }
0x13d2   :  { %654 = vrot.lane.b32.xlu0 %v857_v36, %s862_s1  ;;  %v650_v37 = vmul.f32 0.5, %v857_v36 }
0x13d4   :  { %v651_v38 = vadd.f32 0.5, %v650_v37 }
0x13d6   :  { %v652_v10 = vmul.f32 %v651_v38, %v593_v25 }
0x1444   :  { %v655_v39 = vpop.permute.xlu0 %654 }
0x1445   :  { %v657_v40 = vmul.f32 %v655_v39, %v651_v38 }
0x1447   :  { %659 = vrot.lane.b32.xlu1 %v657_v40, %s863_s23 }
0x144b   :  { %675 = vrot.lane.b32.xlu1 %v717_v41, %s866_s6 }
0x14b9   :  { %v660_v11 = vpop.permute.xlu1 %659 }
0x14ba   :  { %v662_v42 = vadd.f32 %v660_v11, %v652_v10 }
0x14bc   :  { %858 = vtanh.f32 %v662_v42 }
0x14bd   :  { %v676_v45 = vpop.permute.xlu1 %675 }
0x14c9   :  { %v859_v43 = vpop.eup %858 }
0x14ca   :  { %665 = vrot.lane.b32.xlu0 %v859_v43, %s862_s1 }
0x153c   :  { %v666_v44 = vpop.permute.xlu0 %665 }
0x153d   :  { %v668_v46 = vmul.f32 %v666_v44, %v651_v38 }
0x153f   :  { %v678_v47 = vmul.f32 %v676_v45, %v668_v46 }
0x1541   :  { %680 = vrot.lane.b32.xlu0 %v678_v47, %s863_s23 }
0x15b3   :  { %v681_v48 = vpop.permute.xlu0 %680 }
0x15b4   :  { %v683_v49 = vsel %vm189_vm6, %v681_v48, 0.0 }
0x15b5   :  { %684 = vadd.xlane.f32.xlu1 %v683_v49 }
0x163e   :  { %v685_v50 = vpop.xlane.xlu1 %684 }
0x163f   :  { %v687_v51 = vadd.f32 %v717_v41, %v685_v50 }
0x1641   :  { %689 = vrot.lane.b32.xlu0 %v687_v51, %s866_s6 }
0x16b3   :  { %v690_v52 = vpop.permute.xlu0 %689 }
0x16b4   :  { %693 = vst.msk [vmem:[%s1038_s4] sm:$0xff] %vm692_vm7, %v690_v52 }

</bundles_post_ra>
